<compile_context>
chip_gen: v7x
topology: tpu7x:2x2x1
jax: 0.10.0
libtpu: 0.0.40
codegen_flags: <defaults>
</compile_context>

<pallas_src>
import jax
import jax.numpy as jnp
import numpy as np
from jax import lax
from jax.experimental import pallas as pl
from jax.experimental.pallas import tpu as pltpu

EPS = 1e-5


# ---------------------------------------------------------------------------
# kernels
# ---------------------------------------------------------------------------
def conv3_stats_kernel(x_ref, w3b_ref, b3_ref, y1_ref, st_ref):
    """Pass 1: 3x3 conv (+bias) for one image, plus per-image BN partial sums."""
    x = x_ref[0]                                    # (H, W*Cin)
    H = x.shape[0]
    zrow = jnp.zeros((1, x.shape[1]), jnp.float32)
    x_up = jnp.concatenate([zrow, x[:H - 1, :]], axis=0)   # row h -> x[h-1]
    x_dn = jnp.concatenate([x[1:, :], zrow], axis=0)       # row h -> x[h+1]
    # one lane-dense matmul per kernel row; kx taps folded into banded weights
    acc = (jnp.dot(x_up, w3b_ref[0], preferred_element_type=jnp.float32)
           + jnp.dot(x, w3b_ref[1], preferred_element_type=jnp.float32)
           + jnp.dot(x_dn, w3b_ref[2], preferred_element_type=jnp.float32))
    y1 = acc + b3_ref[...]                          # (H, W*Cout) + (1, W*Cout)
    y1_ref[0] = y1
    # BatchNorm statistics fused into the conv epilogue (per-image partials)
    st_ref[0] = jnp.concatenate(
        [jnp.sum(y1, axis=0, keepdims=True),
         jnp.sum(y1 * y1, axis=0, keepdims=True)], axis=0)


def combine_kernel(x_ref, y1_ref, w1b_ref, b1_ref, scale_ref, shift_ref, out_ref):
    """Pass 2: normalise branch 1 (BN+ReLU), 1x1 branch 2, add, final ReLU."""
    x = x_ref[0]                                    # (H, W*Cin)
    y1 = y1_ref[0]                                  # (H, W*Cout)
    y1n = jnp.maximum(y1 * scale_ref[...] + shift_ref[...], 0.0)
    y2 = jnp.dot(x, w1b_ref[...], preferred_element_type=jnp.float32) + b1_ref[...]
    out_ref[0] = jnp.maximum(y1n + y2, 0.0)


# ---------------------------------------------------------------------------
# wrapper-side weight packing (tiny, done once per call under jit)
# ---------------------------------------------------------------------------
def _band_conv3_weight(w3, W):
    """(3,3,Cin,Cout) HWIO -> (3, W*Cin, W*Cout) banded matrices.

    band[ky, win*Cin+ci, wout*Cout+co] = w3[ky, win-wout+1, ci, co]
    (zero when win-wout+1 not in [0,3)), so x_row(W*Cin) @ band realises the
    full kx sweep of the 3x3 conv including the width borders."""
    Cin, Cout = w3.shape[2], w3.shape[3]
    win = jnp.arange(W)[:, None]
    wout = jnp.arange(W)[None, :]
    kx = win - wout + 1
    valid = ((kx >= 0) & (kx < 3)).astype(w3.dtype)
    g = w3[:, jnp.clip(kx, 0, 2)]                   # (3, W, W, Cin, Cout)
    g = g * valid[None, :, :, None, None]
    g = jnp.transpose(g, (0, 1, 3, 2, 4))           # (3, win, Cin, wout, Cout)
    return g.reshape(3, W * Cin, W * Cout)


def _blockdiag_weight(w1, W):
    """(Cin, Cout) -> (W*Cin, W*Cout) block diagonal (per-pixel 1x1 conv)."""
    Cin, Cout = w1.shape
    eye = jnp.eye(W, dtype=w1.dtype)
    g = eye[:, None, :, None] * w1[None, :, None, :]  # (W, Cin, W, Cout)
    return g.reshape(W * Cin, W * Cout)


def _tile_lanes(v, W):
    """(.., C) -> (1, W*C), replicated per pixel (lane layout w*C + c)."""
    return jnp.tile(v.reshape(1, -1), (1, W))


# ---------------------------------------------------------------------------
# forward
# ---------------------------------------------------------------------------
@jax.jit
def residual_forward(x_nchw, params):
    """x_nchw: (N, Cin, H, W) float32 -> (N, Cout, H, W) float32."""
    w3, b3, gamma, beta, w1, b1 = params
    N, Cin, H, W = x_nchw.shape
    Cout = w3.shape[-1]
    WCin, WCout = W * Cin, W * Cout
    P = N * H * W

    # TODO(synk): NCHW<->NHWC transposes kept as wrapper glue because the
    # PyTorch interface is NCHW; an NHWC end-to-end pipeline would drop them.
    x = jnp.transpose(x_nchw, (0, 2, 3, 1)).reshape(N, H, WCin).astype(jnp.float32)

    w3b = _band_conv3_weight(w3.astype(jnp.float32), W)
    w1b = _blockdiag_weight(w1.astype(jnp.float32), W)
    b3t = _tile_lanes(b3, W).astype(jnp.float32)
    b1t = _tile_lanes(b1, W).astype(jnp.float32)

    cparams = pltpu.CompilerParams(
        dimension_semantics=("parallel",),          # images split across TCs
        vmem_limit_bytes=32 * 1024 * 1024,          # fits v7x scoped VMEM
    )

    # ---- pass 1: conv3x3 + bias -> y1, per-image BN sum / sum-of-squares ---
    flops1 = int(N * (3 * H * WCin * WCout * 2 + 6 * H * WCout))
    bytes1 = int(4 * (N * H * WCin + 3 * WCin * WCout + WCout
                      + N * H * WCout + N * 2 * WCout))
    y1, stats = pl.pallas_call(
        conv3_stats_kernel,
        grid=(N,),
        in_specs=[
            pl.BlockSpec((1, H, WCin), lambda n: (n, 0, 0)),       # x tile
            pl.BlockSpec((3, WCin, WCout), lambda n: (0, 0, 0)),   # weights: DMA once
            pl.BlockSpec((1, WCout), lambda n: (0, 0)),            # bias: DMA once
        ],
        out_specs=(
            pl.BlockSpec((1, H, WCout), lambda n: (n, 0, 0)),      # y1 (lane-dense)
            pl.BlockSpec((1, 2, WCout), lambda n: (n, 0, 0)),      # per-image stats
        ),
        out_shape=(
            jax.ShapeDtypeStruct((N, H, WCout), jnp.float32),
            jax.ShapeDtypeStruct((N, 2, WCout), jnp.float32),
        ),
        compiler_params=cparams,
        cost_estimate=pl.CostEstimate(flops=flops1, transcendentals=0,
                                      bytes_accessed=bytes1),
    )(x, w3b, b3t)

    # ---- BN statistics finalisation (tiny O(Cout) per-channel glue) --------
    s = stats.sum(axis=0).reshape(2, W, Cout).sum(axis=1)          # (2, Cout)
    mean = s[0] / P
    var = s[1] / P - mean * mean                                   # biased (training mode)
    scale = gamma.reshape(Cout) * lax.rsqrt(var + EPS)
    shift = beta.reshape(Cout) - mean * scale
    scale_t = _tile_lanes(scale, W).astype(jnp.float32)
    shift_t = _tile_lanes(shift, W).astype(jnp.float32)

    # ---- pass 2: BN + ReLU, 1x1 branch, residual add, final ReLU -----------
    flops2 = int(N * (H * WCin * WCout * 2 + 6 * H * WCout))
    bytes2 = int(4 * (N * H * WCin + N * H * WCout + WCin * WCout + 3 * WCout
                      + N * H * WCout))
    out = pl.pallas_call(
        combine_kernel,
        grid=(N,),
        in_specs=[
            pl.BlockSpec((1, H, WCin), lambda n: (n, 0, 0)),       # x tile (reused)
            pl.BlockSpec((1, H, WCout), lambda n: (n, 0, 0)),      # y1 tile
            pl.BlockSpec((WCin, WCout), lambda n: (0, 0)),         # 1x1 weights: once
            pl.BlockSpec((1, WCout), lambda n: (0, 0)),            # b1: once
            pl.BlockSpec((1, WCout), lambda n: (0, 0)),            # BN scale: once
            pl.BlockSpec((1, WCout), lambda n: (0, 0)),            # BN shift: once
        ],
        out_specs=pl.BlockSpec((1, H, WCout), lambda n: (n, 0, 0)),
        out_shape=jax.ShapeDtypeStruct((N, H, WCout), jnp.float32),
        compiler_params=cparams,
        cost_estimate=pl.CostEstimate(flops=flops2, transcendentals=0,
                                      bytes_accessed=bytes2),
    )(x, y1, w1b, b1t, scale_t, shift_t)

    out = out.reshape(N, H, W, Cout)
    return jnp.transpose(out, (0, 3, 1, 2))                        # NHWC -> NCHW


# ---------------------------------------------------------------------------
# params / reference
# ---------------------------------------------------------------------------
def init_params(key, cin, cout):
    k3, kb3, k1, kb1 = jax.random.split(key, 4)
    fan3 = cin * 3 * 3
    w3 = jax.random.uniform(k3, (3, 3, cin, cout), jnp.float32,
                            -1.0 / np.sqrt(fan3), 1.0 / np.sqrt(fan3))
    b3 = jax.random.uniform(kb3, (1, cout), jnp.float32,
                            -1.0 / np.sqrt(fan3), 1.0 / np.sqrt(fan3))
    gamma = jnp.ones((1, cout), jnp.float32)
    beta = jnp.zeros((1, cout), jnp.float32)
    fan1 = cin
    w1 = jax.random.uniform(k1, (cin, cout), jnp.float32,
                            -1.0 / np.sqrt(fan1), 1.0 / np.sqrt(fan1))
    b1 = jax.random.uniform(kb1, (1, cout), jnp.float32,
                            -1.0 / np.sqrt(fan1), 1.0 / np.sqrt(fan1))
    return (w3, b3, gamma, beta, w1, b1)


def residual_reference(x_nchw, params):
    """Pure-JAX reference (matches the PyTorch forward in training mode)."""
    w3, b3, gamma, beta, w1, b1 = params
    x = jnp.transpose(x_nchw, (0, 2, 3, 1))
    y1 = lax.conv_general_dilated(x, w3, (1, 1), 'SAME',
                                  dimension_numbers=('NHWC', 'HWIO', 'NHWC'))
    y1 = y1 + b3.reshape(1, 1, 1, -1)
    mean = jnp.mean(y1, axis=(0, 1, 2), keepdims=True)
    var = jnp.mean((y1 - mean) ** 2, axis=(0, 1, 2), keepdims=True)
    y1 = (y1 - mean) * lax.rsqrt(var + EPS) * gamma.reshape(1, 1, 1, -1) \
         + beta.reshape(1, 1, 1, -1)
    y1 = jnp.maximum(y1, 0.0)
    y2 = jnp.einsum('nhwc,cd->nhwd', x, w1) + b1.reshape(1, 1, 1, -1)
    out = jnp.maximum(y1 + y2, 0.0)
    return jnp.transpose(out, (0, 3, 1, 2))


if __name__ == "__main__":
    key = jax.random.PRNGKey(0)
    kx, kp = jax.random.split(key)

    N, Cin, Cout, H, W = 2, 4, 8, 16, 16
    x = jax.random.normal(kx, (N, Cin, H, W), jnp.float32)
    params = init_params(kp, Cin, Cout)

    out = jax.block_until_ready(residual_forward(x, params))
    ref = jax.block_until_ready(residual_reference(x, params))
    np.testing.assert_allclose(np.asarray(out), np.asarray(ref),
                               rtol=1e-4, atol=1e-4)
    print("KERNEL_OK")
</pallas_src>

<mosaic_0001>
module attributes {stable_mosaic.version = 11 : i64} {
  func.func @conv3_stats_kernel(%arg0: i32, %arg1: memref<1x16x64xf32, #tpu.memory_space<vmem>>, %arg2: memref<3x64x128xf32, #tpu.memory_space<vmem>>, %arg3: memref<1x128xf32, #tpu.memory_space<vmem>>, %arg4: memref<1x16x128xf32, #tpu.memory_space<vmem>>, %arg5: memref<1x2x128xf32, #tpu.memory_space<vmem>>) attributes {dimension_semantics = [#tpu.dimension_semantics<parallel>], iteration_bounds = array<i64: 2>, scalar_prefetch = 0 : i64, scratch_operands = 0 : i64, tpu.core_type = #tpu.core_type<tc>, window_params = [{transform_indices = @transform_0, window_bounds = array<i64: 1, 16, 64>}, {pipeline_mode = #tpu.pipeline_mode<synchronous>, transform_indices = @transform_1, window_bounds = array<i64: 3, 64, 128>}, {pipeline_mode = #tpu.pipeline_mode<synchronous>, transform_indices = @transform_2, window_bounds = array<i64: 1, 128>}, {transform_indices = @transform_3, window_bounds = array<i64: 1, 16, 128>}, {transform_indices = @transform_4, window_bounds = array<i64: 1, 2, 128>}]} {
    %c0 = arith.constant 0 : index
    %c0_0 = arith.constant 0 : index
    %c0_1 = arith.constant 0 : index
    %0 = vector.load %arg1[%c0, %c0_0, %c0_1] : memref<1x16x64xf32, #tpu.memory_space<vmem>>, vector<1x16x64xf32>
    %1 = vector.shape_cast %0 : vector<1x16x64xf32> to vector<16x64xf32>
    %cst = arith.constant 0.000000e+00 : f32
    %2 = vector.broadcast %cst : f32 to vector<1x64xf32>
    %3 = vector.extract_strided_slice %1 {offsets = [0, 0], sizes = [15, 64], strides = [1, 1]} : vector<16x64xf32> to vector<15x64xf32>
    %4 = tpu.concatenate %2, %3 in 0 : vector<1x64xf32>, vector<15x64xf32> -> vector<16x64xf32>
    %5 = vector.extract_strided_slice %1 {offsets = [1, 0], sizes = [15, 64], strides = [1, 1]} : vector<16x64xf32> to vector<15x64xf32>
    %6 = tpu.concatenate %5, %2 in 0 : vector<15x64xf32>, vector<1x64xf32> -> vector<16x64xf32>
    %c0_2 = arith.constant 0 : index
    %c0_3 = arith.constant 0 : index
    %c0_4 = arith.constant 0 : index
    %7 = vector.load %arg2[%c0_2, %c0_3, %c0_4] : memref<3x64x128xf32, #tpu.memory_space<vmem>>, vector<1x64x128xf32>
    %8 = vector.shape_cast %7 : vector<1x64x128xf32> to vector<64x128xf32>
    %cst_5 = arith.constant dense<0.000000e+00> : vector<16x128xf32>
    %9 = tpu.matmul %4, %8, %cst_5 {dimension_numbers = #tpu.dot_dimension_numbers<[1], [0], [0], [1], [0, 0, 1, 1], [], []>} : vector<16x64xf32>, vector<64x128xf32>, vector<16x128xf32> -> vector<16x128xf32>
    %c1 = arith.constant 1 : index
    %c0_6 = arith.constant 0 : index
    %c0_7 = arith.constant 0 : index
    %10 = vector.load %arg2[%c1, %c0_6, %c0_7] : memref<3x64x128xf32, #tpu.memory_space<vmem>>, vector<1x64x128xf32>
    %11 = vector.shape_cast %10 : vector<1x64x128xf32> to vector<64x128xf32>
    %cst_8 = arith.constant dense<0.000000e+00> : vector<16x128xf32>
    %12 = tpu.matmul %1, %11, %cst_8 {dimension_numbers = #tpu.dot_dimension_numbers<[1], [0], [0], [1], [0, 0, 1, 1], [], []>} : vector<16x64xf32>, vector<64x128xf32>, vector<16x128xf32> -> vector<16x128xf32>
    %13 = arith.addf %9, %12 : vector<16x128xf32>
    %c2 = arith.constant 2 : index
    %c0_9 = arith.constant 0 : index
    %c0_10 = arith.constant 0 : index
    %14 = vector.load %arg2[%c2, %c0_9, %c0_10] : memref<3x64x128xf32, #tpu.memory_space<vmem>>, vector<1x64x128xf32>
    %15 = vector.shape_cast %14 : vector<1x64x128xf32> to vector<64x128xf32>
    %cst_11 = arith.constant dense<0.000000e+00> : vector<16x128xf32>
    %16 = tpu.matmul %6, %15, %cst_11 {dimension_numbers = #tpu.dot_dimension_numbers<[1], [0], [0], [1], [0, 0, 1, 1], [], []>} : vector<16x64xf32>, vector<64x128xf32>, vector<16x128xf32> -> vector<16x128xf32>
    %17 = arith.addf %13, %16 : vector<16x128xf32>
    %c0_12 = arith.constant 0 : index
    %c0_13 = arith.constant 0 : index
    %18 = vector.load %arg3[%c0_12, %c0_13] : memref<1x128xf32, #tpu.memory_space<vmem>>, vector<1x128xf32>
    %19 = vector.broadcast %18 : vector<1x128xf32> to vector<16x128xf32>
    %20 = arith.addf %17, %19 : vector<16x128xf32>
    %c0_14 = arith.constant 0 : index
    %c0_15 = arith.constant 0 : index
    %c0_16 = arith.constant 0 : index
    %21 = vector.load %arg4[%c0_14, %c0_15, %c0_16] : memref<1x16x128xf32, #tpu.memory_space<vmem>>, vector<1x16x128xf32>
    %22 = vector.shape_cast %21 : vector<1x16x128xf32> to vector<16x128xf32>
    %23 = vector.shape_cast %20 : vector<16x128xf32> to vector<1x16x128xf32>
    tpu.vector_store %arg4[%c0_14, %c0_15, %c0_16], %23 {strides = array<i32>} : memref<1x16x128xf32, #tpu.memory_space<vmem>>, vector<1x16x128xf32>,
    %cst_17 = arith.constant dense<0.000000e+00> : vector<128xf32>
    %24 = vector.multi_reduction <add>, %20, %cst_17 [0] : vector<16x128xf32> to vector<128xf32>
    %25 = vector.shape_cast %24 : vector<128xf32> to vector<1x128xf32>
    %26 = arith.mulf %20, %20 : vector<16x128xf32>
    %cst_18 = arith.constant dense<0.000000e+00> : vector<128xf32>
    %27 = vector.multi_reduction <add>, %26, %cst_18 [0] : vector<16x128xf32> to vector<128xf32>
    %28 = vector.shape_cast %27 : vector<128xf32> to vector<1x128xf32>
    %29 = tpu.concatenate %25, %28 in 0 : vector<1x128xf32>, vector<1x128xf32> -> vector<2x128xf32>
    %c0_19 = arith.constant 0 : index
    %c0_20 = arith.constant 0 : index
    %c0_21 = arith.constant 0 : index
    %30 = vector.load %arg5[%c0_19, %c0_20, %c0_21] : memref<1x2x128xf32, #tpu.memory_space<vmem>>, vector<1x2x128xf32>
    %31 = vector.shape_cast %30 : vector<1x2x128xf32> to vector<2x128xf32>
    %32 = vector.shape_cast %29 : vector<2x128xf32> to vector<1x2x128xf32>
    tpu.vector_store %arg5[%c0_19, %c0_20, %c0_21], %32 {strides = array<i32>} : memref<1x2x128xf32, #tpu.memory_space<vmem>>, vector<1x2x128xf32>,
    return
  }
  func.func @transform_0(%arg0: i32) -> (i32, i32, i32) {
    %c0_i32 = arith.constant 0 : i32
    %c0_i32_0 = arith.constant 0 : i32
    %c0_i32_1 = arith.constant 0 : i32
    return %arg0, %c0_i32, %c0_i32_0 : i32, i32, i32
  }
  func.func @transform_1(%arg0: i32) -> (i32, i32, i32) {
    %c0_i32 = arith.constant 0 : i32
    %c0_i32_0 = arith.constant 0 : i32
    %c0_i32_1 = arith.constant 0 : i32
    %c0_i32_2 = arith.constant 0 : i32
    return %c0_i32, %c0_i32_0, %c0_i32_1 : i32, i32, i32
  }
  func.func @transform_2(%arg0: i32) -> (i32, i32) {
    %c0_i32 = arith.constant 0 : i32
    %c0_i32_0 = arith.constant 0 : i32
    %c0_i32_1 = arith.constant 0 : i32
    return %c0_i32, %c0_i32_0 : i32, i32
  }
  func.func @transform_3(%arg0: i32) -> (i32, i32, i32) {
    %c0_i32 = arith.constant 0 : i32
    %c0_i32_0 = arith.constant 0 : i32
    %c0_i32_1 = arith.constant 0 : i32
    return %arg0, %c0_i32, %c0_i32_0 : i32, i32, i32
  }
  func.func @transform_4(%arg0: i32) -> (i32, i32, i32) {
    %c0_i32 = arith.constant 0 : i32
    %c0_i32_0 = arith.constant 0 : i32
    %c0_i32_1 = arith.constant 0 : i32
    return %arg0, %c0_i32, %c0_i32_0 : i32, i32, i32
  }
}

module attributes {stable_mosaic.version = 11 : i64} {
  func.func @combine_kernel(%arg0: i32, %arg1: memref<1x16x64xf32, #tpu.memory_space<vmem>>, %arg2: memref<1x16x128xf32, #tpu.memory_space<vmem>>, %arg3: memref<64x128xf32, #tpu.memory_space<vmem>>, %arg4: memref<1x128xf32, #tpu.memory_space<vmem>>, %arg5: memref<1x128xf32, #tpu.memory_space<vmem>>, %arg6: memref<1x128xf32, #tpu.memory_space<vmem>>, %arg7: memref<1x16x128xf32, #tpu.memory_space<vmem>>) attributes {dimension_semantics = [#tpu.dimension_semantics<parallel>], iteration_bounds = array<i64: 2>, scalar_prefetch = 0 : i64, scratch_operands = 0 : i64, tpu.core_type = #tpu.core_type<tc>, window_params = [{transform_indices = @transform_0, window_bounds = array<i64: 1, 16, 64>}, {transform_indices = @transform_1, window_bounds = array<i64: 1, 16, 128>}, {pipeline_mode = #tpu.pipeline_mode<synchronous>, transform_indices = @transform_2, window_bounds = array<i64: 64, 128>}, {pipeline_mode = #tpu.pipeline_mode<synchronous>, transform_indices = @transform_3, window_bounds = array<i64: 1, 128>}, {pipeline_mode = #tpu.pipeline_mode<synchronous>, transform_indices = @transform_4, window_bounds = array<i64: 1, 128>}, {pipeline_mode = #tpu.pipeline_mode<synchronous>, transform_indices = @transform_5, window_bounds = array<i64: 1, 128>}, {transform_indices = @transform_6, window_bounds = array<i64: 1, 16, 128>}]} {
    %c0 = arith.constant 0 : index
    %c0_0 = arith.constant 0 : index
    %c0_1 = arith.constant 0 : index
    %0 = vector.load %arg1[%c0, %c0_0, %c0_1] : memref<1x16x64xf32, #tpu.memory_space<vmem>>, vector<1x16x64xf32>
    %1 = vector.shape_cast %0 : vector<1x16x64xf32> to vector<16x64xf32>
    %c0_2 = arith.constant 0 : index
    %c0_3 = arith.constant 0 : index
    %c0_4 = arith.constant 0 : index
    %2 = vector.load %arg2[%c0_2, %c0_3, %c0_4] : memref<1x16x128xf32, #tpu.memory_space<vmem>>, vector<1x16x128xf32>
    %3 = vector.shape_cast %2 : vector<1x16x128xf32> to vector<16x128xf32>
    %c0_5 = arith.constant 0 : index
    %c0_6 = arith.constant 0 : index
    %4 = vector.load %arg5[%c0_5, %c0_6] : memref<1x128xf32, #tpu.memory_space<vmem>>, vector<1x128xf32>
    %5 = vector.broadcast %4 : vector<1x128xf32> to vector<16x128xf32>
    %6 = arith.mulf %3, %5 : vector<16x128xf32>
    %c0_7 = arith.constant 0 : index
    %c0_8 = arith.constant 0 : index
    %7 = vector.load %arg6[%c0_7, %c0_8] : memref<1x128xf32, #tpu.memory_space<vmem>>, vector<1x128xf32>
    %8 = vector.broadcast %7 : vector<1x128xf32> to vector<16x128xf32>
    %9 = arith.addf %6, %8 : vector<16x128xf32>
    %cst = arith.constant 0.000000e+00 : f32
    %10 = vector.broadcast %cst : f32 to vector<16x128xf32>
    %11 = arith.maximumf %9, %10 : vector<16x128xf32>
    %c0_9 = arith.constant 0 : index
    %c0_10 = arith.constant 0 : index
    %12 = vector.load %arg3[%c0_9, %c0_10] : memref<64x128xf32, #tpu.memory_space<vmem>>, vector<64x128xf32>
    %cst_11 = arith.constant dense<0.000000e+00> : vector<16x128xf32>
    %13 = tpu.matmul %1, %12, %cst_11 {dimension_numbers = #tpu.dot_dimension_numbers<[1], [0], [0], [1], [0, 0, 1, 1], [], []>} : vector<16x64xf32>, vector<64x128xf32>, vector<16x128xf32> -> vector<16x128xf32>
    %c0_12 = arith.constant 0 : index
    %c0_13 = arith.constant 0 : index
    %14 = vector.load %arg4[%c0_12, %c0_13] : memref<1x128xf32, #tpu.memory_space<vmem>>, vector<1x128xf32>
    %15 = vector.broadcast %14 : vector<1x128xf32> to vector<16x128xf32>
    %16 = arith.addf %13, %15 : vector<16x128xf32>
    %17 = arith.addf %11, %16 : vector<16x128xf32>
    %cst_14 = arith.constant 0.000000e+00 : f32
    %18 = vector.broadcast %cst_14 : f32 to vector<16x128xf32>
    %19 = arith.maximumf %17, %18 : vector<16x128xf32>
    %c0_15 = arith.constant 0 : index
    %c0_16 = arith.constant 0 : index
    %c0_17 = arith.constant 0 : index
    %20 = vector.load %arg7[%c0_15, %c0_16, %c0_17] : memref<1x16x128xf32, #tpu.memory_space<vmem>>, vector<1x16x128xf32>
    %21 = vector.shape_cast %20 : vector<1x16x128xf32> to vector<16x128xf32>
    %22 = vector.shape_cast %19 : vector<16x128xf32> to vector<1x16x128xf32>
    tpu.vector_store %arg7[%c0_15, %c0_16, %c0_17], %22 {strides = array<i32>} : memref<1x16x128xf32, #tpu.memory_space<vmem>>, vector<1x16x128xf32>,
    return
  }
  func.func @transform_0(%arg0: i32) -> (i32, i32, i32) {
    %c0_i32 = arith.constant 0 : i32
    %c0_i32_0 = arith.constant 0 : i32
    %c0_i32_1 = arith.constant 0 : i32
    return %arg0, %c0_i32, %c0_i32_0 : i32, i32, i32
  }
  func.func @transform_1(%arg0: i32) -> (i32, i32, i32) {
    %c0_i32 = arith.constant 0 : i32
    %c0_i32_0 = arith.constant 0 : i32
    %c0_i32_1 = arith.constant 0 : i32
    return %arg0, %c0_i32, %c0_i32_0 : i32, i32, i32
  }
  func.func @transform_2(%arg0: i32) -> (i32, i32) {
    %c0_i32 = arith.constant 0 : i32
    %c0_i32_0 = arith.constant 0 : i32
    %c0_i32_1 = arith.constant 0 : i32
    return %c0_i32, %c0_i32_0 : i32, i32
  }
  func.func @transform_3(%arg0: i32) -> (i32, i32) {
    %c0_i32 = arith.constant 0 : i32
    %c0_i32_0 = arith.constant 0 : i32
    %c0_i32_1 = arith.constant 0 : i32
    return %c0_i32, %c0_i32_0 : i32, i32
  }
  func.func @transform_4(%arg0: i32) -> (i32, i32) {
    %c0_i32 = arith.constant 0 : i32
    %c0_i32_0 = arith.constant 0 : i32
    %c0_i32_1 = arith.constant 0 : i32
    return %c0_i32, %c0_i32_0 : i32, i32
  }
  func.func @transform_5(%arg0: i32) -> (i32, i32) {
    %c0_i32 = arith.constant 0 : i32
    %c0_i32_0 = arith.constant 0 : i32
    %c0_i32_1 = arith.constant 0 : i32
    return %c0_i32, %c0_i32_0 : i32, i32
  }
  func.func @transform_6(%arg0: i32) -> (i32, i32, i32) {
    %c0_i32 = arith.constant 0 : i32
    %c0_i32_0 = arith.constant 0 : i32
    %c0_i32_1 = arith.constant 0 : i32
    return %arg0, %c0_i32, %c0_i32_0 : i32, i32, i32
  }
}

</mosaic_0001>

<bundles_post_ra>
// kernel: residual_forward.2
= control target key start
LH: loop header
LB: loop body
LE: loop exit
PB: predicated region body
PF: predicated region fallthrough
CT: control target
= control target key end

     0   :  { %s825_s15 = smov 0   ;;  %s939_s0 = inlined_call_operand.vmem [shape: f32[2,16,64], index: 0, kind: input, shape index: {}]   ;;  %s940_s1 = inlined_call_operand.vmem [shape: f32[3,64,128], index: 1, kind: input, shape index: {}]   ;;  %s941_s2 = inlined_call_operand.vmem [shape: f32[1,128], index: 2, kind: input, shape index: {}]   ;;  %s942_s3 = inlined_call_operand.vmem [shape: f32[2,16,128], index: 3, kind: output, shape index: {0}]   ;;  %s943_s4 = inlined_call_operand.vmem [shape: f32[2,2,128], index: 4, kind: output, shape index: {1}]  }
   0x1 LB: > { %s608_s16 = sadd.s32 4294967295, %s798_s15   ;;  %p612_p0 = scmp.ge.s32.totalorder %s798_s15, 1  ;;  %s798_s15 = sphi %s825_s15, %s15_s15  }
   0x2   : > { %p165_p1 = scmp.lt.s32.totalorder %s798_s15, 3 }
   0x4   : > { %p166_p2 = pnand %p612_p0, %p165_p1 }
   0x5   : > { %v225_v0 = vld [vmem:[%s940_s1] sm:$0xff] (!%p166_p2)  ;;  %v226_v1 = vld [vmem:[%s940_s1 + $0x8] sm:$0xff] (!%p166_p2)  ;;  %v227_v2 = vld [vmem:[%s940_s1 + $0x10] sm:$0xff] (!%p166_p2)  ;;  %p195_p3 = scmp.lt.s32.totalorder (!%p166_p2), %s608_s16, 1  ;;  %vm213_vm0 = vcmask (!%p166_p2), 1040384   ;;  %vm242_vm1 = vcmask (!%p166_p2), 523264  }
   0x6   : > { %169 = sbr.rel (%p166_p2) target bundleno = 275 (0x113), region = 32  ;;  %v748_v3 = vpack.c.bf16 (!%p166_p2), %v226_v1, %v225_v0  ;;  %v228_v4 = vld [vmem:[%s940_s1 + $0x18] sm:$0xff] (!%p166_p2)  ;;  %v229_v6 = vld [vmem:[%s940_s1 + $0x20] sm:$0xff] (!%p166_p2)  ;;  %v230_v7 = vld [vmem:[%s940_s1 + $0x28] sm:$0xff] (!%p166_p2)  ;;  %vm219_vm2 = vcmask (!%p166_p2), 1046528  }
   0x7   : > { %v752_v5 = vpack.c.bf16 (!%p166_p2), %v228_v4, %v227_v2  ;;  %v618_v8 = vld [vmem:[%s940_s1 + $0x40] sm:$0xff] (!%p166_p2)  ;;  %v619_v9 = vld [vmem:[%s940_s1 + $0x48] sm:$0xff] (!%p166_p2)  ;;  %v620_v11 = vld [vmem:[%s940_s1 + $0x50] sm:$0xff] (!%p166_p2)  ;;  %v756_v13 = vpack.c.bf16 (!%p166_p2), %v230_v7, %v229_v6 }
   0x8   : > { %749 = vmatprep.subr.bf16.mxu0 (!%p166_p2), %v748_v3  ;;  %v732_v10 = vpack.c.bf16 (!%p166_p2), %v619_v9, %v618_v8  ;;  %v621_v12 = vld [vmem:[%s940_s1 + $0x58] sm:$0xff] (!%p166_p2)  ;;  %v622_v15 = vld [vmem:[%s940_s1 + $0x60] sm:$0xff] (!%p166_p2)  ;;  %v623_v16 = vld [vmem:[%s940_s1 + $0x68] sm:$0xff] (!%p166_p2) }
   0x9   : > { %751 = vmatpush3.bf16.msra.mxu0 (!%p166_p2), %v748_v3  ;;  %v736_v14 = vpack.c.bf16 (!%p166_p2), %v621_v12, %v620_v11  ;;  %v231_v17 = vld [vmem:[%s940_s1 + $0x30] sm:$0xff] (!%p166_p2)  ;;  %v232_v18 = vld [vmem:[%s940_s1 + $0x38] sm:$0xff] (!%p166_p2)  ;;  %v740_v21 = vpack.c.bf16 (!%p166_p2), %v623_v16, %v622_v15  ;;  %v630_v27 = vld [vmem:[%s940_s1 + $0x80] sm:$0xff] (!%p166_p2) }
   0xa   : > { %753 = vmatprep.subr.bf16.mxu0 (!%p166_p2), %v752_v5  ;;  %733 = vmatprep.subr.bf16.mxu1 (!%p166_p2), %v732_v10  ;;  %v760_v22 = vpack.c.bf16 (!%p166_p2), %v232_v18, %v231_v17  ;;  %v624_v25 = vld [vmem:[%s940_s1 + $0x70] sm:$0xff] (!%p166_p2)  ;;  %v625_v26 = vld [vmem:[%s940_s1 + $0x78] sm:$0xff] (!%p166_p2)  ;;  %v631_v28 = vld [vmem:[%s940_s1 + $0x88] sm:$0xff] (!%p166_p2) }
   0xb   : > { %735 = vmatpush3.bf16.msra.mxu1 (!%p166_p2), %v732_v10  ;;  %v744_v30 = vpack.c.bf16 (!%p166_p2), %v625_v26, %v624_v25  ;;  %v764_v32 = vpack.c.bf16 (!%p166_p2), %v631_v28, %v630_v27  ;;  %v632_v34 = vld [vmem:[%s940_s1 + $0x90] sm:$0xff] (!%p166_p2)  ;;  %v633_v35 = vld [vmem:[%s940_s1 + $0x98] sm:$0xff] (!%p166_p2)  ;;  %v634_v39 = vld [vmem:[%s940_s1 + $0xa0] sm:$0xff] (!%p166_p2) }
   0xc   : > { %737 = vmatprep.subr.bf16.mxu1 (!%p166_p2), %v736_v14  ;;  %v768_v37 = vpack.c.bf16 (!%p166_p2), %v633_v35, %v632_v34  ;;  %v635_v40 = vld [vmem:[%s940_s1 + $0xa8] sm:$0xff] (!%p166_p2)  ;;  %v636_v42 = vld [vmem:[%s940_s1 + $0xb0] sm:$0xff] (!%p166_p2)  ;;  %v637_v43 = vld [vmem:[%s940_s1 + $0xb8] sm:$0xff] (!%p166_p2) }
   0xd   : > { %s945_s16 = smov (!%p195_p3, %s608_s16), 1  ;;  %755 = vmatpush3.bf16.msra.mxu0 %v752_v5  ;;  %v772_v41 = vpack.c.bf16 %v635_v40, %v634_v39  ;;  %v776_v44 = vpack.c.bf16 %v637_v43, %v636_v42  ;;  %v640_v49 = vld [vmem:[%s941_s2] ss:$0 sm:$0xff] }
   0xe   : > { %s643_s7 = sshll.u32 %s945_s16, 4  ;;  %757 = vmatprep.subr.bf16.mxu0 %v756_v13 }
   0xf   : > { %s199_s14 = scalar_lea.vmem %s939_s0, %s643_s7  ;;  %739 = vmatpush3.bf16.msra.mxu1 %v736_v14  ;;  %s204_s26 = scalar_lea.vmem %s942_s3, %s643_s7 }
  0x10   : > { %v209_v19 = vld [vmem:[%s199_s14] sm:$0xff]  ;;  %v210_v23 = vld [vmem:[%s199_s14 + $0x8] sm:$0xff]  ;;  %741 = vmatprep.subr.bf16.mxu1 %v740_v21  ;;  %s617_s7 = sshll.u32 %s945_s16, 1 }
  0x11   : > { %v214_v20 = vrot.slane %v209_v19, 7  ;;  %691 = vmatprep.mubr.msk.f32.mxu1 %vm242_vm1, %v209_v19  ;;  %759 = vmatpush3.bf16.msra.mxu0 %v756_v13  ;;  %v215_v29 = vrot.slane %v210_v23, 7  ;;  %v220_v31 = vrot.slane %v209_v19, 1  ;;  %v221_v33 = vrot.slane %v210_v23, 1  ;;  %s208_s29 = scalar_lea.vmem %s943_s4, %s617_s7 }
  0x12   : > { %761 = vmatprep.subr.bf16.mxu0 %v760_v22 }
  0x13   : > { %v218_v24 = vsel %vm213_vm0, 0.0, %v214_v20  ;;  %743 = vmatpush3.bf16.msra.mxu1 %v740_v21  ;;  %v216_v36 = vsel %vm213_vm0, %v214_v20, %v215_v29  ;;  %v222_v38 = vsel %vm219_vm2, %v220_v31, %v221_v33  ;;  %v224_v45 = vsel %vm219_vm2, %v221_v33, 0.0 }
  0x14   : > { %710 = vmatprep.mubr.msk.f32.mxu0 %vm242_vm1, %v218_v24  ;;  %745 = vmatprep.subr.bf16.mxu1 %v744_v30 }
  0x15   : > { %763 = vmatpush3.bf16.msra.mxu0 %v760_v22 }
  0x16   : > { %765 = vmatprep.subr.bf16.mxu0 %v764_v32 }
  0x17   : > { %747 = vmatpush3.bf16.msra.mxu1 %v744_v30 }
  0x18   : > { %711 = vmatmul.mubr.msk.f32.vlgmr.msra.gmra.mrb[0].mxu0 %vm242_vm1, %v216_v36 }
  0x19   : > { %767 = vmatpush3.bf16.msra.mxu0 %v764_v32  ;;  %729 = vmatprep.mubr.msk.f32.mxu0 %vm242_vm1, %v222_v38 }
  0x1a   : > { %769 = vmatprep.subr.bf16.mxu0 %v768_v37  ;;  %692 = vmatmul.mubr.msk.f32.vlgmr.msra.gmra.mrb[0].mxu1 %vm242_vm1, %v210_v23 }
  0x1d   : > { %771 = vmatpush3.bf16.msra.mxu0 %v768_v37 }
  0x1e   : > { %773 = vmatprep.subr.bf16.mxu0 %v772_v41 }
  0x21   : > { %775 = vmatpush3.bf16.msra.mxu0 %v772_v41 }
  0x22   : > { %777 = vmatprep.subr.bf16.mxu0 %v776_v44 }
  0x25   : > { %779 = vmatpush3.bf16.msra.mxu0 %v776_v44 }
  0x28   : > { %730 = vmatmul.mubr.msk.f32.vlgmr.msra.gmra.mrb[0].mxu0 %vm242_vm1, %v224_v45 }
  0xed   : > { %v693_v46 = vpop.f32.mrb[0].mxu1 }
  0xee   : > { %v313_v47 = vpop.f32.mrb[1].mxu1 }
  0xfb   : > { %v731_v48 = vpop.f32.mrb[0].mxu0 }
  0xfc   : > { %v780_v50 = vadd.f32 %v731_v48, %v693_v46  ;;  %v482_v51 = vpop.f32.mrb[1].mxu0 }
  0xfd   : > { %v781_v52 = vadd.f32 %v482_v51, %v313_v47 }
  0xfe   : > { %v501_v53 = vadd.f32 %v780_v50, %v640_v49 }
  0xff   : > { %v500_v54 = vadd.f32 %v781_v52, %v640_v49 }
 0x100   : > { %503 = vst [vmem:[%s204_s26 + $0x8] sm:$0xff] %v501_v53  ;;  %v512_v55 = vmul.f32 %v501_v53, %v501_v53 }
 0x101   : > { %502 = vst [vmem:[%s204_s26] sm:$0xff] %v500_v54  ;;  %v504_v56 = vadd.f32 %v501_v53, %v500_v54  ;;  %v511_v57 = vmul.f32 %v500_v54, %v500_v54 }
 0x103   : > { %v505_v58 = vrot.slane %v504_v56, 4  ;;  %v513_v59 = vadd.f32 %v512_v55, %v511_v57 }
 0x105   : > { %v506_v60 = vadd.f32 %v505_v58, %v504_v56  ;;  %v514_v61 = vrot.slane %v513_v59, 4 }
 0x107   : > { %v507_v62 = vrot.slane %v506_v60, 2  ;;  %v515_v63 = vadd.f32 %v514_v61, %v513_v59 }
 0x109   : > { %v508_v0 = vadd.f32 %v507_v62, %v506_v60  ;;  %v516_v1 = vrot.slane %v515_v63, 2 }
 0x10b   : > { %v509_v2 = vrot.slane %v508_v0, 1  ;;  %v517_v3 = vadd.f32 %v516_v1, %v515_v63 }
 0x10d   : > { %v518_v4 = vrot.slane %v517_v3, 1  ;;  %v510_v5 = vadd.f32 %v509_v2, %v508_v0 }
 0x10f   : > { %v519_v6 = vadd.f32 %v518_v4, %v517_v3 }
 0x111   : > { %v520_v7 = vsel %vm213_vm0, %v510_v5, %v519_v6 }
 0x112   : > { %521 = vst [vmem:[%s208_s29] sm:$0x3] %v520_v7 }
 0x113 PF: > { %s15_s15 = sadd.s32 1, %s798_s15  }
 0x114   : > { %p12_p4 = scmp.ge.s32.totalorder %s15_s15, 4  }
 0x116   :  { %14 = sbr.rel (!%p12_p4) target bundleno = 1 (0x1), region = 76 }

// kernel: residual_forward.3
= control target key start
LH: loop header
LB: loop body
LE: loop exit
PB: predicated region body
PF: predicated region fallthrough
CT: control target
= control target key end

     0   :  { %s583_s21 = smov 0   ;;  %s641_s0 = inlined_call_operand.vmem [shape: f32[2,16,64], index: 0, kind: input, shape index: {}]   ;;  %s642_s1 = inlined_call_operand.vmem [shape: f32[2,16,128], index: 1, kind: input, shape index: {}]   ;;  %s643_s2 = inlined_call_operand.vmem [shape: f32[64,128], index: 2, kind: input, shape index: {}]   ;;  %s644_s3 = inlined_call_operand.vmem [shape: f32[1,128], index: 3, kind: input, shape index: {}]   ;;  %s645_s4 = inlined_call_operand.vmem [shape: f32[1,128], index: 4, kind: input, shape index: {}]   ;;  %s646_s5 = inlined_call_operand.vmem [shape: f32[1,128], index: 5, kind: input, shape index: {}]   ;;  %s647_s6 = inlined_call_operand.vmem [shape: f32[2,16,128], index: 6, kind: output, shape index: {}]  }
   0x1 LB: > { %s466_s22 = sadd.s32 4294967295, %s546_s21   ;;  %p470_p0 = scmp.ge.s32.totalorder %s546_s21, 1  ;;  %s546_s21 = sphi %s583_s21, %s16_s21  }
   0x2   : > { %p222_p1 = scmp.lt.s32.totalorder %s546_s21, 3 }
   0x4   : > { %p223_p2 = pnand %p470_p0, %p222_p1 }
   0x5   : > { %v296_v0 = vld [vmem:[%s643_s2] sm:$0xff] (!%p223_p2)  ;;  %v297_v1 = vld [vmem:[%s643_s2 + $0x8] sm:$0xff] (!%p223_p2)  ;;  %v298_v2 = vld [vmem:[%s643_s2 + $0x10] sm:$0xff] (!%p223_p2)  ;;  %p257_p3 = scmp.lt.s32.totalorder (!%p223_p2), %s466_s22, 1  ;;  %vm311_vm0 = vcmask (!%p223_p2), 523264  }
   0x6   : > { %226 = sbr.rel (%p223_p2) target bundleno = 244 (0xf4), region = 44  ;;  %v516_v3 = vpack.c.bf16 (!%p223_p2), %v297_v1, %v296_v0  ;;  %v299_v4 = vld [vmem:[%s643_s2 + $0x18] sm:$0xff] (!%p223_p2)  ;;  %v300_v6 = vld [vmem:[%s643_s2 + $0x20] sm:$0xff] (!%p223_p2)  ;;  %v301_v7 = vld [vmem:[%s643_s2 + $0x28] sm:$0xff] (!%p223_p2) }
   0x7   : > { %v520_v5 = vpack.c.bf16 (!%p223_p2), %v299_v4, %v298_v2  ;;  %v524_v8 = vpack.c.bf16 (!%p223_p2), %v301_v7, %v300_v6  ;;  %v302_v9 = vld [vmem:[%s643_s2 + $0x30] sm:$0xff] (!%p223_p2)  ;;  %v303_v10 = vld [vmem:[%s643_s2 + $0x38] sm:$0xff] (!%p223_p2)  ;;  %v477_v15 = vld [vmem:[%s645_s4] ss:$0 sm:$0xff] (!%p223_p2) }
   0x8   : > { %517 = vmatprep.subr.bf16.mxu0 (!%p223_p2), %v516_v3  ;;  %v528_v12 = vpack.c.bf16 (!%p223_p2), %v303_v10, %v302_v9  ;;  %v478_v18 = vld [vmem:[%s646_s5] ss:$0 sm:$0xff] (!%p223_p2) }
   0x9   : > { %519 = vmatpush3.bf16.msra.mxu0 (!%p223_p2), %v516_v3  ;;  %v479_v22 = vld [vmem:[%s644_s3] ss:$0 sm:$0xff] (!%p223_p2) }
   0xa   : > { %521 = vmatprep.subr.bf16.mxu0 (!%p223_p2), %v520_v5 }
   0xd   : > { %s649_s22 = smov (!%p257_p3, %s466_s22), 1  ;;  %523 = vmatpush3.bf16.msra.mxu0 %v520_v5 }
   0xe   : > { %s609_s11 = sshll.u32 %s649_s22, 4  ;;  %525 = vmatprep.subr.bf16.mxu0 %v524_v8 }
   0xf   : > { %s261_s14 = scalar_lea.vmem %s641_s0, %s609_s11  ;;  %s266_s22 = scalar_lea.vmem %s642_s1, %s609_s11 }
  0x10   : > { %v272_v11 = vld [vmem:[%s261_s14] sm:$0xff]  ;;  %v273_v13 = vld [vmem:[%s261_s14 + $0x8] sm:$0xff]  ;;  %s271_s7 = scalar_lea.vmem %s647_s6, %s609_s11 }
  0x11   : > { %513 = vmatprep.mubr.msk.f32.mxu0 %vm311_vm0, %v272_v11  ;;  %527 = vmatpush3.bf16.msra.mxu0 %v524_v8  ;;  %v275_v14 = vld [vmem:[%s266_s22 + $0x8] sm:$0xff]  ;;  %v274_v16 = vld [vmem:[%s266_s22] sm:$0xff] }
  0x12   : > { %529 = vmatprep.subr.bf16.mxu0 %v528_v12  ;;  %v284_v17 = vmul.f32 %v477_v15, %v275_v14  ;;  %v283_v19 = vmul.f32 %v477_v15, %v274_v16 }
  0x14   : > { %v293_v20 = vadd.f32 %v478_v18, %v284_v17  ;;  %v292_v21 = vadd.f32 %v478_v18, %v283_v19 }
  0x15   : > { %531 = vmatpush3.bf16.msra.mxu0 %v528_v12 }
  0x16   : > { %v295_v23 = vmax.f32 %v293_v20, 0.0  ;;  %v294_v25 = vmax.f32 %v292_v21, 0.0 }
  0x18   : > { %514 = vmatmul.mubr.msk.f32.vlgmr.msra.gmra.mrb[0].mxu0 %vm311_vm0, %v273_v13 }
  0xeb   : > { %v515_v24 = vpop.f32.mrb[0].mxu0 }
  0xec   : > { %v390_v26 = vadd.f32 %v515_v24, %v479_v22  ;;  %v384_v27 = vpop.f32.mrb[1].mxu0 }
  0xed   : > { %v385_v28 = vadd.f32 %v479_v22, %v384_v27 }
  0xee   : > { %v394_v29 = vadd.f32 %v390_v26, %v295_v23 }
  0xef   : > { %v393_v30 = vadd.f32 %v385_v28, %v294_v25 }
  0xf0   : > { %v396_v31 = vmax.f32 %v394_v29, 0.0 }
  0xf1   : > { %v395_v32 = vmax.f32 %v393_v30, 0.0 }
  0xf2   : > { %398 = vst [vmem:[%s271_s7 + $0x8] sm:$0xff] %v396_v31 }
  0xf3   : > { %397 = vst [vmem:[%s271_s7] sm:$0xff] %v395_v32 }
  0xf4 PF: > { %s16_s21 = sadd.s32 1, %s546_s21  }
  0xf5   : > { %p13_p4 = scmp.ge.s32.totalorder %s16_s21, 4  }
  0xf7   :  { %15 = sbr.rel (!%p13_p4) target bundleno = 1 (0x1), region = 77 }

</bundles_post_ra>
